<compile_context>
chip_gen: v7x
topology: tpu7x:2x2x1
jax: 0.10.0
libtpu: 0.0.40
codegen_flags: <defaults>
</compile_context>

<pallas_src>
import functools

import jax
import jax.numpy as jnp
from jax.experimental import pallas as pl
from jax.experimental.pallas import tpu as pltpu


def gcn_fused_kernel(a_ref, x_ref, w0_ref, w_ref, b_ref, o_ref, h_scr, *, a_resident):
    """One grid step = (pipeline step s, row tile r).

    a_ref : (N, N) or (TM, N)      bf16  normalized adjacency (resident or row tile)
    x_ref : (TM, f_in_pad)         bf16  row tile of input features (used at s==0)
    w0_ref: (f_in_pad, f_hid_pad)  bf16  layer-0 weight (used at s==0)
    w_ref : (1, f_hid_pad, f_hid_pad) bf16  W'_{s-1}  (identity for s==1)
    b_ref : (1, 1, f_hid_pad)      f32   b_{s-1}
    o_ref : (N, f_hid_pad)         f32   resident output (flushed to HBM once)
    h_scr : (2, N, f_hid_pad)      bf16  ping-pong buffer for the running H
    """
    s = pl.program_id(0)                 # 0 = projection pass, 1..L = GCN layers
    r = pl.program_id(1)
    n_steps = pl.num_programs(0)
    tm = x_ref.shape[0]
    row_start = pl.multiple_of(r * tm, tm)

    cur_slot = s % 2                     # step s writes slot s%2, reads slot (s+1)%2
    prev_slot = (s + 1) % 2

    @pl.when(s == 0)
    def _():
        # Rectangular projection X @ W0, stored bf16 for the layer-0 aggregation.
        proj = jnp.dot(x_ref[...], w0_ref[...], preferred_element_type=jnp.float32)
        h_scr[0, pl.ds(row_start, tm), :] = proj.astype(jnp.bfloat16)

    @pl.when(s > 0)
    def _():
        if a_resident:
            a_tile = a_ref[pl.ds(row_start, tm), :]        # (TM, N) bf16
        else:
            a_tile = a_ref[...]                            # (TM, N) bf16
        h_prev = h_scr[prev_slot]                          # (N, Fh) bf16, no cast

        # aggregate neighbours, then linear transform (f32 MXU accumulation)
        ah = jnp.dot(a_tile, h_prev, preferred_element_type=jnp.float32)   # (TM, Fh)
        h = jnp.dot(ah.astype(jnp.bfloat16), w_ref[0],
                    preferred_element_type=jnp.float32) + b_ref[0]         # (TM, Fh)

        @pl.when(s < n_steps - 1)
        def _():
            # intermediate layer: relu, then store into the current ping-pong slot
            h_scr[cur_slot, pl.ds(row_start, tm), :] = (
                jnp.maximum(h, 0.0).astype(jnp.bfloat16))
            # TODO(synk): nn.Dropout(p=0.1) is identity in eval mode; training-mode
            # dropout would need pltpu.prng_seed / prng_random_bits here.

        @pl.when(s == n_steps - 1)
        def _():
            # last layer: no relu, write into the resident output block
            o_ref[pl.ds(row_start, tm), :] = h.astype(o_ref.dtype)


def _round_up(x, m):
    return ((x + m - 1) // m) * m


def gcn_forward_fused(a_hat, x, params, *, n_hidden, tm=None, a_resident_max_n=2048):
    """Fused multi-layer GCN forward.  params: list of (W, b)."""
    N, f_in = x.shape
    n_layers = len(params)
    assert n_layers >= 1

    f_in_pad = max(128, _round_up(f_in, 128))
    f_hid_pad = max(128, _round_up(n_hidden, 128))

    if tm is None:
        tm = min(256, _round_up(N, 8))
    tm = _round_up(tm, 8)
    n_pad = _round_up(N, tm)
    n_row_tiles = n_pad // tm

    def pad2(m, rows, cols, dtype):
        out = jnp.zeros((rows, cols), dtype)
        return out.at[: m.shape[0], : m.shape[1]].set(m.astype(dtype))

    # A_hat: bf16, zero-padded to (n_pad, n_pad); padded rows/cols contribute nothing.
    a_p = pad2(a_hat, n_pad, n_pad, jnp.bfloat16)
    # TODO(synk): on v7x, stream A_hat as fp8 (e4m3) to halve the dominant HBM/VMEM cost.

    # X: bf16, row-tiled (streamed exactly once, during the projection pass).
    x_p = pad2(x, n_pad, f_in_pad, jnp.bfloat16)

    # Layer-0 weight stays rectangular (f_in_pad, f_hid_pad); the stacked per-layer
    # weight uses identity at index 0 since W0 is already applied in the projection.
    w0, b0 = params[0]
    w0_p = pad2(w0, f_in_pad, f_hid_pad, jnp.bfloat16)
    w_stack = [jnp.eye(f_hid_pad, dtype=jnp.bfloat16)]
    b_stack = [pad2(b0.reshape(1, -1), 1, f_hid_pad, jnp.float32)]
    for (w, b) in params[1:]:
        w_stack.append(pad2(w, f_hid_pad, f_hid_pad, jnp.bfloat16))
        b_stack.append(pad2(b.reshape(1, -1), 1, f_hid_pad, jnp.float32))
    w_p = jnp.stack(w_stack)                                  # (L, Fh, Fh) bf16
    b_p = jnp.stack(b_stack)[:, None, :, :].reshape(n_layers, 1, f_hid_pad)  # noqa
    b_p = jnp.stack(b_stack).reshape(n_layers, 1, f_hid_pad)  # (L, 1, Fh) f32

    a_resident = n_pad <= a_resident_max_n
    grid = (n_layers + 1, n_row_tiles)

    if a_resident:
        a_spec = pl.BlockSpec((n_pad, n_pad), lambda s, r: (0, 0))
    else:
        # Only restream A during the real layer steps, not the projection pass.
        a_spec = pl.BlockSpec((tm, n_pad), lambda s, r: (jnp.where(s == 0, 0, r), 0))

    # Explicit VMEM budget: scratch + resident out + (double-buffered) input blocks.
    vmem_need = (
        2 * n_pad * f_hid_pad * 2                                   # H ping-pong bf16
        + n_pad * f_hid_pad * 4                                     # resident f32 out
        + 2 * (n_pad * n_pad * 2 if a_resident else tm * n_pad * 2)  # A buffers
        + 2 * tm * f_in_pad * 2                                     # X tile buffers
        + 2 * f_in_pad * f_hid_pad * 2                              # W0 buffers
        + 2 * f_hid_pad * f_hid_pad * 2                             # W_l buffers
        + 2 * f_hid_pad * 4                                         # bias buffers
    )
    vmem_limit = int(min(max(int(vmem_need * 1.5) + (2 << 20), 8 << 20), 120 << 20))

    kernel = functools.partial(gcn_fused_kernel, a_resident=a_resident)

    out = pl.pallas_call(
        kernel,
        out_shape=jax.ShapeDtypeStruct((n_pad, f_hid_pad), jnp.float32),
        grid_spec=pltpu.PrefetchScalarGridSpec(
            num_scalar_prefetch=0,
            grid=grid,
            in_specs=[
                a_spec,                                                        # A_hat
                pl.BlockSpec((tm, f_in_pad),
                             lambda s, r: (jnp.where(s == 0, r, 0), 0)),        # X tile
                pl.BlockSpec((f_in_pad, f_hid_pad), lambda s, r: (0, 0)),       # W0
                pl.BlockSpec((1, f_hid_pad, f_hid_pad),
                             lambda s, r: (jnp.maximum(s - 1, 0), 0, 0)),       # W'_l
                pl.BlockSpec((1, 1, f_hid_pad),
                             lambda s, r: (jnp.maximum(s - 1, 0), 0, 0)),       # b_l
            ],
            out_specs=pl.BlockSpec((n_pad, f_hid_pad), lambda s, r: (0, 0)),    # out
            scratch_shapes=[pltpu.VMEM((2, n_pad, f_hid_pad), jnp.bfloat16)],   # H
        ),
        compiler_params=pltpu.CompilerParams(
            # Every row tile of step s reads the FULL H written by step s-1, so both
            # grid axes must stay sequential on one core.
            # TODO(synk): v7x dual-TensorCore split (core_map + VMEM_SHARED/CMEM H +
            # pltpu.core_barrier at layer boundaries) not implemented.
            dimension_semantics=("arbitrary", "arbitrary"),
            vmem_limit_bytes=vmem_limit,
        ),
    )(a_p, x_p, w0_p, w_p, b_p)

    return out[:N, :n_hidden]


def gcn_forward_ref(a_hat, x, params):
    """Pure-JAX f32 reference (same math as the PyTorch/DGL module in eval mode)."""
    h = x
    for i, (w, b) in enumerate(params):
        h = (a_hat @ h) @ w + b
        if i < len(params) - 1:
            h = jnp.maximum(h, 0.0)
    return h


def build_normalized_adjacency(key, n_nodes):
    # Deterministic random undirected graph; reproduce
    # dgl.remove_self_loop + dgl.add_self_loop + 'both' normalization.
    adj = (jax.random.uniform(key, (n_nodes, n_nodes)) < 0.15).astype(jnp.float32)
    adj = jnp.maximum(adj, adj.T)                 # undirected
    adj = adj * (1.0 - jnp.eye(n_nodes))          # remove self loops
    adj = adj + jnp.eye(n_nodes)                  # add self loops
    deg = adj.sum(axis=1)
    d_inv_sqrt = 1.0 / jnp.sqrt(deg)
    return adj * d_inv_sqrt[:, None] * d_inv_sqrt[None, :]


def init_params(key, input_dim, n_hidden, n_layers):
    # DGL GraphConv: xavier-style weight init, zero bias (deterministic here).
    params = []
    dims = [input_dim] + [n_hidden] * n_layers
    keys = jax.random.split(key, n_layers)
    for i in range(n_layers):
        fan_in, fan_out = dims[i], dims[i + 1]
        scale = jnp.sqrt(2.0 / (fan_in + fan_out))
        w = scale * jax.random.normal(keys[i], (fan_in, fan_out), jnp.float32)
        b = jnp.zeros((fan_out,), jnp.float32)
        params.append((w, b))
    return params


if __name__ == "__main__":
    N_NODES = 64
    INPUT_DIM = 8
    N_HIDDEN = 16
    N_LAYERS = 3
    ROW_TILE = 32   # exercises the row-tiled grid (2 row tiles at N=64)

    root = jax.random.PRNGKey(0)
    k_adj, k_feat, k_param = jax.random.split(root, 3)

    a_hat = build_normalized_adjacency(k_adj, N_NODES)                 # [N, N]
    x = jax.random.normal(k_feat, (N_NODES, INPUT_DIM), jnp.float32)   # [N, F_in]
    params = init_params(k_param, INPUT_DIM, N_HIDDEN, N_LAYERS)

    fwd = jax.jit(functools.partial(gcn_forward_fused,
                                    n_hidden=N_HIDDEN, tm=ROW_TILE))
    out = jax.block_until_ready(fwd(a_hat, x, params))

    assert out.shape == (N_NODES, N_HIDDEN)
    assert bool(jnp.all(jnp.isfinite(out)))

    ref = gcn_forward_ref(a_hat, x, params)
    assert bool(jnp.allclose(out, ref, rtol=5e-2, atol=2e-2)), \
        "kernel output deviates from f32 reference beyond bf16 tolerance"

    print("KERNEL_OK")
</pallas_src>

<mosaic_0001>
module attributes {stable_mosaic.version = 11 : i64} {
  func.func @gcn_fused_kernel(%arg0: i32, %arg1: i32, %arg2: memref<64x64xbf16, #tpu.memory_space<vmem>>, %arg3: memref<32x128xbf16, #tpu.memory_space<vmem>>, %arg4: memref<128x128xbf16, #tpu.memory_space<vmem>>, %arg5: memref<1x128x128xbf16, #tpu.memory_space<vmem>>, %arg6: memref<1x1x128xf32, #tpu.memory_space<vmem>>, %arg7: memref<64x128xf32, #tpu.memory_space<vmem>>, %arg8: memref<2x64x128xbf16, #tpu.memory_space<vmem>>) attributes {dimension_semantics = [#tpu.dimension_semantics<arbitrary>, #tpu.dimension_semantics<arbitrary>], iteration_bounds = array<i64: 4, 2>, scalar_prefetch = 0 : i64, scratch_operands = 1 : i64, tpu.core_type = #tpu.core_type<tc>, window_params = [{pipeline_mode = #tpu.pipeline_mode<synchronous>, transform_indices = @transform_0, window_bounds = array<i64: 64, 64>}, {transform_indices = @transform_1, window_bounds = array<i64: 32, 128>}, {pipeline_mode = #tpu.pipeline_mode<synchronous>, transform_indices = @transform_2, window_bounds = array<i64: 128, 128>}, {transform_indices = @transform_3, window_bounds = array<i64: 1, 128, 128>}, {transform_indices = @transform_4, window_bounds = array<i64: 1, 1, 128>}, {pipeline_mode = #tpu.pipeline_mode<synchronous>, transform_indices = @transform_5, window_bounds = array<i64: 64, 128>}]} {
    %c32_i32 = arith.constant 32 : i32
    %0 = arith.muli %arg1, %c32_i32 : i32
    %1 = tpu.assume_multiple %0, 32 : i32
    %c2_i32 = arith.constant 2 : i32
    %c0_i32 = arith.constant 0 : i32
    %2 = arith.cmpi eq, %c2_i32, %c0_i32 : i32
    %c1_i32 = arith.constant 1 : i32
    %3 = arith.select %2, %c1_i32, %c2_i32 : i32
    %4 = arith.remsi %arg0, %3 : i32
    %c0_i32_0 = arith.constant 0 : i32
    %5 = arith.cmpi ne, %4, %c0_i32_0 : i32
    %c0_i32_1 = arith.constant 0 : i32
    %6 = arith.cmpi slt, %4, %c0_i32_1 : i32
    %c0_i32_2 = arith.constant 0 : i32
    %7 = arith.cmpi slt, %3, %c0_i32_2 : i32
    %8 = arith.xori %6, %7 : i1
    %9 = arith.andi %8, %5 : i1
    %10 = arith.addi %4, %3 : i32
    %11 = arith.select %9, %10, %4 : i32
    %c1_i32_3 = arith.constant 1 : i32
    %12 = arith.addi %arg0, %c1_i32_3 : i32
    %c2_i32_4 = arith.constant 2 : i32
    %c0_i32_5 = arith.constant 0 : i32
    %13 = arith.cmpi eq, %c2_i32_4, %c0_i32_5 : i32
    %c1_i32_6 = arith.constant 1 : i32
    %14 = arith.select %13, %c1_i32_6, %c2_i32_4 : i32
    %15 = arith.remsi %12, %14 : i32
    %c0_i32_7 = arith.constant 0 : i32
    %16 = arith.cmpi ne, %15, %c0_i32_7 : i32
    %c0_i32_8 = arith.constant 0 : i32
    %17 = arith.cmpi slt, %15, %c0_i32_8 : i32
    %c0_i32_9 = arith.constant 0 : i32
    %18 = arith.cmpi slt, %14, %c0_i32_9 : i32
    %19 = arith.xori %17, %18 : i1
    %20 = arith.andi %19, %16 : i1
    %21 = arith.addi %15, %14 : i32
    %22 = arith.select %20, %21, %15 : i32
    %c0_i32_10 = arith.constant 0 : i32
    %23 = arith.cmpi eq, %arg0, %c0_i32_10 : i32
    %24 = arith.extui %23 : i1 to i32
    %c0_i32_11 = arith.constant 0 : i32
    %25 = arith.cmpi ne, %24, %c0_i32_11 : i32
    scf.if %25 {
      %c0 = arith.constant 0 : index
      %c0_14 = arith.constant 0 : index
      %29 = vector.load %arg3[%c0, %c0_14] : memref<32x128xbf16, #tpu.memory_space<vmem>>, vector<32x128xbf16>
      %c0_15 = arith.constant 0 : index
      %c0_16 = arith.constant 0 : index
      %30 = vector.load %arg4[%c0_15, %c0_16] : memref<128x128xbf16, #tpu.memory_space<vmem>>, vector<128x128xbf16>
      %cst = arith.constant dense<0.000000e+00> : vector<32x128xf32>
      %31 = tpu.matmul %29, %30, %cst {dimension_numbers = #tpu.dot_dimension_numbers<[1], [0], [0], [1], [0, 0, 1, 1], [], []>} : vector<32x128xbf16>, vector<128x128xbf16>, vector<32x128xf32> -> vector<32x128xf32>
      %32 = arith.truncf %31 : vector<32x128xf32> to vector<32x128xbf16>
      %c0_17 = arith.constant 0 : index
      %33 = arith.index_cast %1 : i32 to index
      %c0_18 = arith.constant 0 : index
      %34 = vector.load %arg8[%c0_17, %33, %c0_18] : memref<2x64x128xbf16, #tpu.memory_space<vmem>>, vector<1x32x128xbf16>
      %35 = vector.shape_cast %34 : vector<1x32x128xbf16> to vector<32x128xbf16>
      %36 = vector.shape_cast %32 : vector<32x128xbf16> to vector<1x32x128xbf16>
      tpu.vector_store %arg8[%c0_17, %33, %c0_18], %36 {strides = array<i32>} : memref<2x64x128xbf16, #tpu.memory_space<vmem>>, vector<1x32x128xbf16>,
    } else {
    }
    %c0_i32_12 = arith.constant 0 : i32
    %26 = arith.cmpi sgt, %arg0, %c0_i32_12 : i32
    %27 = arith.extui %26 : i1 to i32
    %c0_i32_13 = arith.constant 0 : i32
    %28 = arith.cmpi ne, %27, %c0_i32_13 : i32
    scf.if %28 {
      %29 = arith.index_cast %1 : i32 to index
      %c0 = arith.constant 0 : index
      %30 = vector.load %arg2[%29, %c0] : memref<64x64xbf16, #tpu.memory_space<vmem>>, vector<32x64xbf16>
      %31 = arith.index_cast %22 : i32 to index
      %c0_14 = arith.constant 0 : index
      %c0_15 = arith.constant 0 : index
      %32 = vector.load %arg8[%31, %c0_14, %c0_15] : memref<2x64x128xbf16, #tpu.memory_space<vmem>>, vector<1x64x128xbf16>
      %33 = vector.shape_cast %32 : vector<1x64x128xbf16> to vector<64x128xbf16>
      %cst = arith.constant dense<0.000000e+00> : vector<32x128xf32>
      %34 = tpu.matmul %30, %33, %cst {dimension_numbers = #tpu.dot_dimension_numbers<[1], [0], [0], [1], [0, 0, 1, 1], [], []>} : vector<32x64xbf16>, vector<64x128xbf16>, vector<32x128xf32> -> vector<32x128xf32>
      %35 = arith.truncf %34 : vector<32x128xf32> to vector<32x128xbf16>
      %c0_16 = arith.constant 0 : index
      %c0_17 = arith.constant 0 : index
      %c0_18 = arith.constant 0 : index
      %36 = vector.load %arg5[%c0_16, %c0_17, %c0_18] : memref<1x128x128xbf16, #tpu.memory_space<vmem>>, vector<1x128x128xbf16>
      %37 = vector.shape_cast %36 : vector<1x128x128xbf16> to vector<128x128xbf16>
      %cst_19 = arith.constant dense<0.000000e+00> : vector<32x128xf32>
      %38 = tpu.matmul %35, %37, %cst_19 {dimension_numbers = #tpu.dot_dimension_numbers<[1], [0], [0], [1], [0, 0, 1, 1], [], []>} : vector<32x128xbf16>, vector<128x128xbf16>, vector<32x128xf32> -> vector<32x128xf32>
      %c0_20 = arith.constant 0 : index
      %c0_21 = arith.constant 0 : index
      %c0_22 = arith.constant 0 : index
      %39 = vector.load %arg6[%c0_20, %c0_21, %c0_22] : memref<1x1x128xf32, #tpu.memory_space<vmem>>, vector<1x1x128xf32>
      %40 = vector.shape_cast %39 : vector<1x1x128xf32> to vector<1x128xf32>
      %41 = vector.broadcast %40 : vector<1x128xf32> to vector<32x128xf32>
      %42 = arith.addf %38, %41 : vector<32x128xf32>
      %c3_i32 = arith.constant 3 : i32
      %43 = arith.cmpi slt, %arg0, %c3_i32 : i32
      %44 = arith.extui %43 : i1 to i32
      %c0_i32_23 = arith.constant 0 : i32
      %45 = arith.cmpi ne, %44, %c0_i32_23 : i32
      scf.if %45 {
        %cst_26 = arith.constant 0.000000e+00 : f32
        %49 = vector.broadcast %cst_26 : f32 to vector<32x128xf32>
        %50 = arith.maximumf %42, %49 : vector<32x128xf32>
        %51 = arith.truncf %50 : vector<32x128xf32> to vector<32x128xbf16>
        %52 = arith.index_cast %11 : i32 to index
        %53 = arith.index_cast %1 : i32 to index
        %c0_27 = arith.constant 0 : index
        %54 = vector.load %arg8[%52, %53, %c0_27] : memref<2x64x128xbf16, #tpu.memory_space<vmem>>, vector<1x32x128xbf16>
        %55 = vector.shape_cast %54 : vector<1x32x128xbf16> to vector<32x128xbf16>
        %56 = vector.shape_cast %51 : vector<32x128xbf16> to vector<1x32x128xbf16>
        tpu.vector_store %arg8[%52, %53, %c0_27], %56 {strides = array<i32>} : memref<2x64x128xbf16, #tpu.memory_space<vmem>>, vector<1x32x128xbf16>,
      } else {
      }
      %c3_i32_24 = arith.constant 3 : i32
      %46 = arith.cmpi eq, %arg0, %c3_i32_24 : i32
      %47 = arith.extui %46 : i1 to i32
      %c0_i32_25 = arith.constant 0 : i32
      %48 = arith.cmpi ne, %47, %c0_i32_25 : i32
      scf.if %48 {
        %49 = arith.index_cast %1 : i32 to index
        %c0_26 = arith.constant 0 : index
        %50 = vector.load %arg7[%49, %c0_26] : memref<64x128xf32, #tpu.memory_space<vmem>>, vector<32x128xf32>
        tpu.vector_store %arg7[%49, %c0_26], %42 {strides = array<i32>} : memref<64x128xf32, #tpu.memory_space<vmem>>, vector<32x128xf32>,
      } else {
      }
    } else {
    }
    return
  }
  func.func @transform_0(%arg0: i32, %arg1: i32) -> (i32, i32) {
    %c0_i32 = arith.constant 0 : i32
    %c0_i32_0 = arith.constant 0 : i32
    %c0_i32_1 = arith.constant 0 : i32
    return %c0_i32, %c0_i32_0 : i32, i32
  }
  func.func @transform_1(%arg0: i32, %arg1: i32) -> (i32, i32) {
    %c0_i32 = arith.constant 0 : i32
    %0 = arith.cmpi eq, %arg0, %c0_i32 : i32
    %c0_i32_0 = arith.constant 0 : i32
    %1 = arith.select %0, %arg1, %c0_i32_0 : i32
    %c0_i32_1 = arith.constant 0 : i32
    %c0_i32_2 = arith.constant 0 : i32
    return %1, %c0_i32_1 : i32, i32
  }
  func.func @transform_2(%arg0: i32, %arg1: i32) -> (i32, i32) {
    %c0_i32 = arith.constant 0 : i32
    %c0_i32_0 = arith.constant 0 : i32
    %c0_i32_1 = arith.constant 0 : i32
    return %c0_i32, %c0_i32_0 : i32, i32
  }
  func.func @transform_3(%arg0: i32, %arg1: i32) -> (i32, i32, i32) {
    %c1_i32 = arith.constant 1 : i32
    %0 = arith.subi %arg0, %c1_i32 : i32
    %c0_i32 = arith.constant 0 : i32
    %1 = arith.maxsi %0, %c0_i32 : i32
    %c0_i32_0 = arith.constant 0 : i32
    %c0_i32_1 = arith.constant 0 : i32
    %c0_i32_2 = arith.constant 0 : i32
    return %1, %c0_i32_0, %c0_i32_1 : i32, i32, i32
  }
  func.func @transform_4(%arg0: i32, %arg1: i32) -> (i32, i32, i32) {
    %c1_i32 = arith.constant 1 : i32
    %0 = arith.subi %arg0, %c1_i32 : i32
    %c0_i32 = arith.constant 0 : i32
    %1 = arith.maxsi %0, %c0_i32 : i32
    %c0_i32_0 = arith.constant 0 : i32
    %c0_i32_1 = arith.constant 0 : i32
    %c0_i32_2 = arith.constant 0 : i32
    return %1, %c0_i32_0, %c0_i32_1 : i32, i32, i32
  }
  func.func @transform_5(%arg0: i32, %arg1: i32) -> (i32, i32) {
    %c0_i32 = arith.constant 0 : i32
    %c0_i32_0 = arith.constant 0 : i32
    %c0_i32_1 = arith.constant 0 : i32
    return %c0_i32, %c0_i32_0 : i32, i32
  }
}

</mosaic_0001>

<bundles_post_ra>
// kernel: gcn_forward_fused.1
= control target key start
LH: loop header
LB: loop body
LE: loop exit
PB: predicated region body
PF: predicated region fallthrough
CT: control target
= control target key end

     0   :  { %s1068_s18 = smov 0   ;;  %s1070_s19 = smov 0   ;;  %s1203_s0 = inlined_call_operand.vmem [shape: bf16[64,64], index: 0, kind: input, shape index: {}]   ;;  %s1204_s1 = inlined_call_operand.vmem [shape: bf16[64,128], index: 1, kind: input, shape index: {}]   ;;  %s1205_s2 = inlined_call_operand.vmem [shape: bf16[128,128], index: 2, kind: input, shape index: {}]   ;;  %s1206_s3 = inlined_call_operand.vmem [shape: bf16[3,128,128], index: 3, kind: input, shape index: {}]   ;;  %s1207_s4 = inlined_call_operand.vmem [shape: f32[3,1,128], index: 4, kind: input, shape index: {}]   ;;  %s1208_s5 = inlined_call_operand.vmem [shape: f32[64,128], index: 5, kind: output, shape index: {}]  }
   0x1   :  { %s1072_s20 = smov 0   ;;  %s1074_s21 = smov 0  }
   0x2   :  { %s1076_s22 = smov 0  }
   0x3 LB: > { %s24_s23 = sadd.s32 1, %s1028_s20  ;;  %s27_s24 = sadd.s32 1, %s1032_s21  ;;  %s1036_s22 = sphi %s1076_s22, %s15_s22   ;;  %s1032_s21 = sphi %s1074_s21, %s1214_s21   ;;  %s1028_s20 = sphi %s1072_s20, %s1213_s20   ;;  %s1024_s19 = sphi %s1070_s19, %s1212_s19   ;;  %s1020_s18 = sphi %s1068_s18, %s1211_s18  }
   0x4   : > { %p25_p0 = scmp.ge.s32.totalorder %s24_s23, 2  ;;  %p795_p1 = scmp.ge.s32.totalorder %s1036_s22, 1 }
   0x5   : > { %p245_p2 = scmp.lt.s32.totalorder %s1036_s22, 9 }
   0x6   : > { %s1216_s23 = smov (%p25_p0, %s24_s23), 0  ;;  %s1218_s24 = smov (!%p25_p0, %s27_s24), %s1032_s21 }
   0x7   : > { %p246_p3 = pnand %p795_p1, %p245_p2  ;;  %p29_p4 = scmp.ge.s32.totalorder %s1218_s24, 4 }
   0x8   : > { %p284_p5 = scmp.eq.s32.totalorder (!%p246_p3), %s1024_s19, 0  ;;  %s798_s25 = sadd.s32 (!%p246_p3), 4294967295, %s1024_s19 }
   0x9   : > { %s1220_s24 = smov (%p29_p4, %s1218_s24), 0  ;;  %249 = sbr.rel (%p246_p3) target bundleno = 740 (0x2e4), region = 40 }
   0xa   : > { %1209 = sst [smem:[#allocation3_spill]] %s1220_s24  ;;  %p295_p6 = scmp.gt.s32.totalorder (!%p246_p3), %s798_s25, 0 }
   0xb   : > { %p799_p7 = scmp.lt.s32.totalorder (!%p246_p3), %s798_s25, 2  ;;  %s1102_s28 = sshll.u32 (!%p246_p3), %s1020_s18, 5 }
   0xc   : > { %p316_p9 = scmp.lt.s32.totalorder (!%p246_p3), %s1024_s19, 0  ;;  %s317_s15 = ssub.s32 (!%p246_p3), 0, %s1024_s19 }
   0xd   : > { %s813_s16 = smin.u32 (!%p246_p3), %s1024_s19, %s317_s15  ;;  %s328_s17 = sadd.s32 (!%p246_p3), 1, %s1024_s19 }
   0xe   : > { %s330_s24 = ssub.s32 (!%p246_p3), 0, %s328_s17  ;;  %p329_p10 = scmp.lt.s32.totalorder (!%p246_p3), %s328_s17, 0 }
   0xf   : > { %p819_p13 = scmp.ne.s32.totalorder (!%p246_p3), %s1024_s19, 0 }
  0x10   : > { %s285_s26 = scalar_select %p284_p5, %s1020_s18, 0 }
  0x11   : > { %s1222_s25 = smov (!%p295_p6, %s798_s25), 0  ;;  %s319_s18 = sand.u32 1, %s813_s16   ;;  %v978_v0 = vld [vmem:[%s1205_s2] sm:$0xff] (!%p819_p13)   ;;  %v979_v1 = vld [vmem:[%s1205_s2 + $0x8] sm:$0xff] (!%p819_p13)   ;;  %v980_v2 = vld [vmem:[%s1205_s2 + $0x10] sm:$0xff] (!%p819_p13)  }
  0x12   : > { %s796_s27 = sshll.u32 %s285_s26, 2  ;;  %s1224_s25 = smov (!%p799_p7, %s1222_s25), 2  ;;  %886 = vmatprep.subr.bf16.mxu0 (!%p819_p13), %v978_v0  ;;  %v981_v3 = vld [vmem:[%s1205_s2 + $0x18] sm:$0xff] (!%p819_p13)   ;;  %v982_v5 = vld [vmem:[%s1205_s2 + $0x20] sm:$0xff] (!%p819_p13)   ;;  %v983_v6 = vld [vmem:[%s1205_s2 + $0x28] sm:$0xff] (!%p819_p13)  }
  0x13   : > { %p287_p8 = scmp.lt.s32.totalorder %s796_s27, 7  ;;  %s856_s29 = sshll.u32 %s1224_s25, 6  ;;  %887 = vmatpush3.bf16.msra.mxu0 (!%p819_p13), %v978_v0  ;;  %v984_v7 = vld [vmem:[%s1205_s2 + $0x30] sm:$0xff] (!%p819_p13)   ;;  %v985_v8 = vld [vmem:[%s1205_s2 + $0x38] sm:$0xff] (!%p819_p13)  }
  0x14   : > { %s310_s7 = scalar_lea.vmem %s1207_s4, %s1224_s25  ;;  %s1115_s11 = scalar_lea.vmem %s1206_s3, %s856_s29  ;;  %888 = vmatprep.subr.bf16.mxu0 (!%p819_p13), %v979_v1 }
  0x15   : > { %s1226_s27 = smov (!%p287_p8, %s796_s27), 7  ;;  %s320_s26 = ssub.s32 0, %s319_s18 }
  0x16   : > { %s797_s8 = sshll.u32 %s1226_s27, 2  ;;  %s1228_s26 = smov (!%p316_p9, %s320_s26), %s319_s18 }
  0x17   : > { %s1120_s14 = scalar_lea.vmem %s1204_s1, %s797_s8  ;;  %s816_s27 = smin.u32 %s330_s24, %s328_s17  ;;  %889 = vmatpush3.bf16.msra.mxu0 (!%p819_p13), %v979_v1 }
  0x18   : > { %p815_p11 = scmp.lt.s32.totalorder %s1228_s26, 0  ;;  %s326_s30 = sadd.s32 2, %s1228_s26  ;;  %890 = vmatprep.subr.bf16.mxu0 (!%p819_p13), %v980_v2  ;;  %v986_v4 = vld [vmem:[%s1120_s14] sm:$0xff] (!%p819_p13)   ;;  %v987_v9 = vld [vmem:[%s1120_s14 + $0x8] sm:$0xff] (!%p819_p13)  }
  0x19   : > { %s332_s6 = sand.u32 1, %s816_s27   ;;  %344 = sbr.rel (%p819_p13) target bundleno = 268 (0x10c), region = 44  ;;  %902 = vmatprep.mubr.bf16.mxu0 (!%p819_p13), %v986_v4 }
  0x1a   : > { %s1230_s30 = smov (!%p815_p11, %s326_s30), %s1228_s26  ;;  %s333_s29 = ssub.s32 0, %s332_s6 }
  0x1b   : > { %s1232_s29 = smov (!%p329_p10, %s333_s29), %s332_s6  ;;  %891 = vmatpush3.bf16.msra.mxu0 (!%p819_p13), %v980_v2  ;;  %s476_s12 = sshra.s32 (!%p819_p13), %s1102_s28, 4 }
  0x1c   : > { %p818_p12 = scmp.lt.s32.totalorder %s1232_s29, 0  ;;  %s339_s8 = sadd.s32 2, %s1232_s29  ;;  %892 = vmatprep.subr.bf16.mxu0 (!%p819_p13), %v981_v3 }
  0x1d   : > { %s830_s13 = sshll.u32 (!%p819_p13), %s476_s12, 3 }
  0x1e   : > { %s1234_s8 = smov (!%p818_p12, %s339_s8), %s1232_s29  ;;  %s479_s15 = scalar_lea.vmem (!%p819_p13), [#allocation2], %s830_s13 }
  0x1f   : > { %893 = vmatpush3.bf16.msra.mxu0 (!%p819_p13), %v981_v3 }
  0x20   : > { %894 = vmatprep.subr.bf16.mxu0 %v982_v5 }
  0x23   : > { %895 = vmatpush3.bf16.msra.mxu0 %v982_v5 }
  0x24   : > { %896 = vmatprep.subr.bf16.mxu0 %v983_v6 }
  0x27   : > { %897 = vmatpush3.bf16.msra.mxu0 %v983_v6 }
  0x28   : > { %898 = vmatprep.subr.bf16.mxu0 %v984_v7 }
  0x2b   : > { %899 = vmatpush3.bf16.msra.mxu0 %v984_v7 }
  0x2c   : > { %900 = vmatprep.subr.bf16.mxu0 %v985_v8 }
  0x2f   : > { %901 = vmatpush3.bf16.msra.mxu0 %v985_v8 }
  0x32   : > { %903 = vmatmul.mubr.bf16.vlgmr.msra.gmra.mrb[0].mxu0 %v987_v9 }
 0x105   : > { %v904_v10 = vpop.f32.mrb[0].mxu0 }
 0x106   : > { %v459_v11 = vpop.f32.mrb[1].mxu0 }
 0x107   : > { %v905_v12 = vpop.f32.mrb[2].mxu0 }
 0x108   : > { %v475_v13 = vpack.c.bf16 %v905_v12, %v904_v10  ;;  %v462_v14 = vpop.f32.mrb[3].mxu0 }
 0x109   : > { %v474_v15 = vpack.c.bf16 %v462_v14, %v459_v11 }
 0x10a   : > { %481 = vst [vmem:[%s479_s15 + $0x8] sm:$0xff] %v475_v13 }
 0x10b   : > { %480 = vst [vmem:[%s479_s15] sm:$0xff] %v474_v15 }
 0x10c PF: > { %p831_p0 = scmp.le.s32.totalorder %s1024_s19, 0 }
 0x10d   : > { %s859_s14 = sshll.u32 (!%p831_p0), %s1234_s8, 5  ;;  %s486_s16 = sshra.s32 (!%p831_p0), %s1102_s28, 3  ;;  %v990_v16 = vld [vmem:[%s1115_s11] sm:$0xff] (!%p831_p0)   ;;  %vm511_vm0 = vcmask (!%p831_p0), 523264   ;;  %v991_v21 = vld [vmem:[%s1115_s11 + $0x8] sm:$0xff] (!%p831_p0)   ;;  %v992_v22 = vld [vmem:[%s1115_s11 + $0x10] sm:$0xff] (!%p831_p0)  }
 0x10e   : > { %485 = sbr.rel (%p831_p0) target bundleno = 740 (0x2e4), region = 48  ;;  %s832_s17 = sshll.u32 (!%p831_p0), %s486_s16, 2  ;;  %918 = vmatprep.subr.bf16.mxu1 (!%p831_p0), %v990_v16  ;;  %v993_v23 = vld [vmem:[%s1115_s11 + $0x18] sm:$0xff] (!%p831_p0)   ;;  %v994_v25 = vld [vmem:[%s1115_s11 + $0x20] sm:$0xff] (!%p831_p0)   ;;  %v995_v27 = vld [vmem:[%s1115_s11 + $0x28] sm:$0xff] (!%p831_p0)  }
 0x10f   : > { %s496_s18 = scalar_lea.vmem (!%p831_p0), [#allocation2], %s859_s14  ;;  %s489_s6 = scalar_lea.vmem (!%p831_p0), %s1203_s0, %s832_s17  ;;  %919 = vmatpush3.bf16.msra.mxu1 (!%p831_p0), %v990_v16  ;;  %v996_v28 = vld [vmem:[%s1115_s11 + $0x30] sm:$0xff] (!%p831_p0)   ;;  %v997_v29 = vld [vmem:[%s1115_s11 + $0x38] sm:$0xff] (!%p831_p0)   ;;  %v839_v36 = vld [vmem:[%s310_s7] ss:$0 sm:$0xff] (!%p831_p0) }
 0x110   : > { %v988_v19 = vld [vmem:[%s489_s6] sm:$0xff] (!%p831_p0)   ;;  %920 = vmatprep.subr.bf16.mxu1 (!%p831_p0), %v991_v21  ;;  %v989_v26 = vld [vmem:[%s489_s6 + $0x8] sm:$0xff] (!%p831_p0)   ;;  %p848_p1 = scmp.ge.s32.totalorder (!%p831_p0), %s1024_s19, 3 }
 0x111   : > { %914 = vmatprep.mubr.msk.bf16.mxu0 (!%p831_p0), %vm511_vm0, %v988_v19 }
 0x112   : > { %v497_v17 = vld [vmem:[%s496_s18] sm:$0xff] (!%p831_p0)  ;;  %v498_v18 = vld [vmem:[%s496_s18 + $0x8] sm:$0xff] (!%p831_p0)  ;;  %v499_v20 = vld [vmem:[%s496_s18 + $0x10] sm:$0xff] (!%p831_p0) }
 0x113   : > { %906 = vmatprep.subr.bf16.mxu0 (!%p831_p0), %v497_v17  ;;  %921 = vmatpush3.bf16.msra.mxu1 (!%p831_p0), %v991_v21  ;;  %v500_v24 = vld [vmem:[%s496_s18 + $0x18] sm:$0xff] (!%p831_p0) }
 0x114   : > { %907 = vmatpush3.bf16.msra.mxu0 (!%p831_p0), %v497_v17  ;;  %922 = vmatprep.subr.bf16.mxu1 (!%p831_p0), %v992_v22 }
 0x115   : > { %908 = vmatprep.subr.bf16.mxu0 %v498_v18  ;;  %s699_s11 = sshra.s32 (!%p848_p1), %s1102_s28, 4  ;;  %s849_s9 = sshll.u32 (!%p848_p1), %s1230_s30, 2 }
 0x116   : > { %s702_s25 = sadd.s32 (!%p848_p1), %s849_s9, %s699_s11 }
 0x117   : > { %923 = vmatpush3.bf16.msra.mxu1 %v992_v22  ;;  %s850_s7 = sshll.u32 (!%p848_p1), %s702_s25, 3 }
 0x118   : > { %909 = vmatpush3.bf16.msra.mxu0 %v498_v18  ;;  %924 = vmatprep.subr.bf16.mxu1 %v993_v23  ;;  %s704_s10 = scalar_lea.vmem (!%p848_p1), [#allocation2], %s850_s7 }
 0x119   : > { %910 = vmatprep.subr.bf16.mxu0 %v499_v20 }
 0x11b   : > { %925 = vmatpush3.bf16.msra.mxu1 %v993_v23 }
 0x11c   : > { %911 = vmatpush3.bf16.msra.mxu0 %v499_v20  ;;  %926 = vmatprep.subr.bf16.mxu1 %v994_v25 }
 0x11d   : > { %912 = vmatprep.subr.bf16.mxu0 %v500_v24 }
 0x11f   : > { %927 = vmatpush3.bf16.msra.mxu1 %v994_v25 }
 0x120   : > { %913 = vmatpush3.bf16.msra.mxu0 %v500_v24  ;;  %928 = vmatprep.subr.bf16.mxu1 %v995_v27 }
 0x123   : > { %915 = vmatmul.mubr.msk.bf16.vlgmr.msra.gmra.mrb[0].mxu0 %vm511_vm0, %v989_v26  ;;  %929 = vmatpush3.bf16.msra.mxu1 %v995_v27 }
 0x124   : > { %930 = vmatprep.subr.bf16.mxu1 %v996_v28 }
 0x127   : > { %931 = vmatpush3.bf16.msra.mxu1 %v996_v28 }
 0x128   : > { %932 = vmatprep.subr.bf16.mxu1 %v997_v29 }
 0x12b   : > { %933 = vmatpush3.bf16.msra.mxu1 %v997_v29 }
 0x1f6   : > { %v916_v30 = vpop.f32.mrb[0].mxu0 }
 0x1f7   : > { %v552_v31 = vpop.f32.mrb[1].mxu0 }
 0x1f8   : > { %v917_v32 = vpop.f32.mrb[2].mxu0 }
 0x1f9   : > { %v568_v33 = vpack.c.bf16 %v917_v32, %v916_v30  ;;  %v555_v34 = vpop.f32.mrb[3].mxu0 }
 0x1fa   : > { %v567_v35 = vpack.c.bf16 %v555_v34, %v552_v31 }
 0x1fc   : > { %934 = vmatprep.mubr.bf16.mxu1 %v567_v35 }
 0x1fd   : > { %935 = vmatmul.mubr.bf16.vlgmr.msra.gmra.mrb[0].mxu1 %v568_v33 }
 0x2ce   : > { %692 = sbr.rel (%p848_p1) target bundleno = 731 (0x2db), region = 52 }
 0x2d0   : > { %v936_v37 = vpop.f32.mrb[0].mxu1 }
 0x2d1   : > { %v683_v38 = vadd.f32 %v936_v37, %v839_v36  ;;  %v674_v39 = vpop.f32.mrb[1].mxu1 }
 0x2d2   : > { %v675_v40 = vadd.f32 %v839_v36, %v674_v39  ;;  %v937_v41 = vpop.f32.mrb[2].mxu1 }
 0x2d3   : > { %v686_v42 = vadd.f32 %v937_v41, %v839_v36  ;;  %v677_v43 = vpop.f32.mrb[3].mxu1  ;;  %v695_v47 = vmax.f32 (!%p848_p1), %v683_v38, 0.0 }
 0x2d4   : > { %v678_v44 = vadd.f32 %v839_v36, %v677_v43  ;;  %v693_v45 = vmax.f32 (!%p848_p1), %v675_v40, 0.0 }
 0x2d5   : > { %v696_v48 = vmax.f32 %v686_v42, 0.0 }
 0x2d6   : > { %v694_v46 = vmax.f32 %v678_v44, 0.0 }
 0x2d7   : > { %v698_v50 = vpack.c.bf16 %v696_v48, %v695_v47 }
 0x2d8   : > { %v697_v49 = vpack.c.bf16 %v694_v46, %v693_v45 }
 0x2d9   : > { %706 = vst [vmem:[%s704_s10 + $0x8] sm:$0xff] %v698_v50 }
 0x2da   : > { %705 = vst [vmem:[%s704_s10] sm:$0xff] %v697_v49 }
 0x2db PF: > { %p851_p2 = scmp.ne.s32.totalorder %s1024_s19, 3 }
 0x2dc   : > { %s711_s13 = scalar_lea.vmem (!%p851_p2), %s1208_s5, %s1102_s28 }
 0x2dd   : > { %710 = sbr.rel (%p851_p2) target bundleno = 740 (0x2e4), region = 56  ;;  %712 = vst [vmem:[%s711_s13] sm:$0xff] (!%p851_p2), %v675_v40  ;;  %713 = vst [vmem:[%s711_s13 + $0x8] sm:$0xff] (!%p851_p2), %v678_v44 }
 0x2de   : > { %714 = vst [vmem:[%s711_s13 + $0x10] sm:$0xff] (!%p851_p2), %v683_v38  ;;  %715 = vst [vmem:[%s711_s13 + $0x18] sm:$0xff] (!%p851_p2), %v686_v42 }
 0x2e4 PF: > { %s15_s22 = sadd.s32 1, %s1036_s22   ;;  %s1210_s30 = sld [smem:[#allocation3_spill]] }
 0x2e5   : > { %p12_p3 = scmp.ge.s32.totalorder %s15_s22, 10   ;;  %s1211_s18 = smov %s1028_s20 }
 0x2e6   : > { %s1212_s19 = smov %s1032_s21  ;;  %s1213_s20 = smov %s1216_s23 }
 0x2e7   :  { %14 = sbr.rel (!%p12_p3) target bundleno = 3 (0x3), region = 93 }
 0x2ea   : > { %s1214_s21 = smov %s1210_s30 }

</bundles_post_ra>
